<compile_context>
chip_gen: v6e
topology: v6e:2x2x1
jax: 0.10.0
libtpu: 0.0.40
codegen_flags: <defaults>
</compile_context>

<pallas_src>
import functools

import jax
import jax.numpy as jnp
from jax.experimental import pallas as pl
from jax.experimental.pallas import tpu as pltpu

_LANE = 128


def _round_up(n, m):
    return ((n + m - 1) // m) * m


def _encoder_kernel(xT_ref, hT_ref, epsT_ref, w_ref, b_ref, out_ref, *, meta):
    """Feature-major MLP: features on sublanes, batch on the 128-lane axis."""
    (I, H, D1, D4, L,
     o_w1h, o_w1x, o_w2, o_w3, o_w4,
     o_b1, o_b2, o_b3, o_b4) = meta
    f32 = jnp.float32
    cdt = w_ref.dtype          # matmul-input dtype (f32 or bf16); accum is f32

    hT = hT_ref[...].astype(cdt)            # (H, tb)
    xT = xT_ref[...].astype(cdt)            # (I, tb)

    # Static carves out of the packed weight / bias slabs.  The w2/w3/w4 blocks
    # are zero-padded so every intermediate activation keeps a fixed D1-row
    # width (zero rows/cols contribute nothing to the dots).
    w1h = w_ref[o_w1h:o_w1h + D1, 0:H]      # (D1, H)
    w1x = w_ref[o_w1x:o_w1x + D1, 0:I]      # (D1, I)
    w2 = w_ref[o_w2:o_w2 + D1, 0:D1]        # (D1, D1), real block (d2, d1)
    w3 = w_ref[o_w3:o_w3 + D1, 0:D1]        # (D1, D1), real block (d3, d2)
    w4 = w_ref[o_w4:o_w4 + D4, 0:D1]        # (D4, D1), real block (D4, d3)

    b1 = b_ref[o_b1:o_b1 + D1, :]           # (D1, 1) column biases
    b2 = b_ref[o_b2:o_b2 + D1, :]
    b3 = b_ref[o_b3:o_b3 + D1, :]
    b4 = b_ref[o_b4:o_b4 + D4, :]

    # Layer 1:  (concat([h, x]) @ W1)^T == W1h^T @ h^T + W1x^T @ x^T + b1.
    a = (jnp.dot(w1h, hT, preferred_element_type=f32)
         + jnp.dot(w1x, xT, preferred_element_type=f32) + b1)
    a = jnp.maximum(a, 0.0).astype(cdt)                               # (D1, tb)

    a = jnp.maximum(jnp.dot(w2, a, preferred_element_type=f32) + b2,
                    0.0).astype(cdt)                                  # (D1, tb)
    a = jnp.maximum(jnp.dot(w3, a, preferred_element_type=f32) + b3,
                    0.0).astype(cdt)                                  # (D1, tb)

    latent = jnp.dot(w4, a, preferred_element_type=f32) + b4          # (2L, tb)

    mean = latent[0:L, :]
    log_var = jnp.clip(latent[L:2 * L, :], -10.0, 10.0)
    std = jnp.exp(0.5 * log_var)
    sample = mean + std * epsT_ref[...]

    # Single lane-dense output slab: rows = [sample | mean | std], batch on lanes.
    out_ref[...] = jnp.concatenate([sample, mean, std], axis=0).astype(out_ref.dtype)


def prepare_params(params, input_dim, hidden_dim, latent_dim,
                   compute_dtype=jnp.float32):
    """One-time packing of the 4 Linear layers into two slabs + static meta.

    Weights in `params` are stored (in_features, out_features) (y = x @ W + b),
    with the layer-1 input rows ordered [h ; x] to match torch.cat([h, x], -1).
    Call once and reuse (wpack, bpack, meta) across forward calls.
    """
    d0 = input_dim + hidden_dim
    d1, d2, d3 = d0 // 2, d0 // 4, d0 // 8
    d4 = 2 * latent_dim

    w1hT = params["w1"][:hidden_dim].T       # (d1, hidden_dim)
    w1xT = params["w1"][hidden_dim:].T       # (d1, input_dim)
    w2T = params["w2"].T                     # (d2, d1)
    w3T = params["w3"].T                     # (d3, d2)
    w4T = params["w4"].T                     # (d4, d3)
    b1 = jnp.reshape(params["b1"], (-1,))
    b2 = jnp.reshape(params["b2"], (-1,))
    b3 = jnp.reshape(params["b3"], (-1,))
    b4 = jnp.reshape(params["b4"], (-1,))

    w_lanes = max(input_dim, hidden_dim, d1)

    # Sublane-aligned row offsets inside the packed slabs.
    w_offs, r = [], 0
    for rows in (d1, d1, d1, d1, d4):        # w1h, w1x, w2(pad), w3(pad), w4
        w_offs.append(r)
        r = _round_up(r + rows, 8)
    o_w1h, o_w1x, o_w2, o_w3, o_w4 = w_offs
    w_rows = _round_up(r, 8)

    wpack = jnp.zeros((w_rows, w_lanes), jnp.float32)
    wpack = wpack.at[o_w1h:o_w1h + d1, :hidden_dim].set(w1hT)
    wpack = wpack.at[o_w1x:o_w1x + d1, :input_dim].set(w1xT)
    wpack = wpack.at[o_w2:o_w2 + d2, :d1].set(w2T)
    wpack = wpack.at[o_w3:o_w3 + d3, :d2].set(w3T)
    wpack = wpack.at[o_w4:o_w4 + d4, :d3].set(w4T)
    wpack = wpack.astype(compute_dtype)

    b_offs, r = [], 0
    for rows in (d1, d1, d1, d4):            # b1, b2(pad), b3(pad), b4
        b_offs.append(r)
        r = _round_up(r + rows, 8)
    o_b1, o_b2, o_b3, o_b4 = b_offs
    b_rows = _round_up(r, 8)

    bpack = jnp.zeros((b_rows, 1), jnp.float32)   # biases stay f32
    bpack = bpack.at[o_b1:o_b1 + d1, 0].set(b1)
    bpack = bpack.at[o_b2:o_b2 + d2, 0].set(b2)
    bpack = bpack.at[o_b3:o_b3 + d3, 0].set(b3)
    bpack = bpack.at[o_b4:o_b4 + d4, 0].set(b4)

    meta = (input_dim, hidden_dim, d1, d4, latent_dim,
            o_w1h, o_w1x, o_w2, o_w3, o_w4,
            o_b1, o_b2, o_b3, o_b4)
    return wpack, bpack, meta


@functools.partial(jax.jit, static_argnames=("meta", "tile_b_target"))
def encoder_forward(x, h, eps, wpack, bpack, *, meta, tile_b_target=2048):
    """Full Encoder forward in one Pallas kernel.

    Returns (sample, mean, std); (mean, std) characterize the Normal dist.
    """
    B, input_dim = x.shape
    hidden_dim = h.shape[-1]
    L = meta[4]

    # ---- batch tiling: the batch dim rides the 128-lane axis ----
    n_lane_tiles = max(1, -(-B // _LANE))
    tiles_per_block = max(1, min(tile_b_target // _LANE, n_lane_tiles))
    num_blocks = -(-n_lane_tiles // tiles_per_block)
    if num_blocks == 1 and n_lane_tiles >= 2:
        # >=2 grid steps so the "parallel" axis can shard over both v7x cores.
        tiles_per_block = (n_lane_tiles + 1) // 2
        num_blocks = -(-n_lane_tiles // tiles_per_block)
    tile_b = tiles_per_block * _LANE
    B_pad = num_blocks * tile_b

    def to_feature_major(a):      # (B, d) -> (d, B_pad), batch on lanes
        aT = a.T
        if B_pad != B:
            aT = jnp.pad(aT, ((0, 0), (0, B_pad - B)))
        return aT

    xT = to_feature_major(x)
    hT = to_feature_major(h)
    epsT = to_feature_major(eps)

    kernel = functools.partial(_encoder_kernel, meta=meta)

    out = pl.pallas_call(
        kernel,
        out_shape=jax.ShapeDtypeStruct((3 * L, B_pad), jnp.float32),
        grid=(num_blocks,),
        in_specs=[
            pl.BlockSpec((input_dim, tile_b), lambda i: (0, i)),   # xT
            pl.BlockSpec((hidden_dim, tile_b), lambda i: (0, i)),  # hT
            pl.BlockSpec((L, tile_b), lambda i: (0, i)),           # epsT
            pl.BlockSpec(wpack.shape, lambda i: (0, 0)),           # packed weights
            pl.BlockSpec(bpack.shape, lambda i: (0, 0)),           # packed biases
        ],
        out_specs=pl.BlockSpec((3 * L, tile_b), lambda i: (0, i)),
        compiler_params=pltpu.CompilerParams(
            dimension_semantics=("parallel",)),
    )(xT, hT, epsT, wpack, bpack)

    sample = out[0:L, :B].T
    mean = out[L:2 * L, :B].T
    std = out[2 * L:3 * L, :B].T
    return sample, mean, std


def init_params(key, input_dim, hidden_dim, latent_dim):
    """Deterministic synthetic parameter init (shapes match the PyTorch module).

    Weights are stored (in_features, out_features) so y = x @ W + b matches
    PyTorch's x @ W.T + b semantics.
    """
    d = input_dim + hidden_dim
    dims = [d, d // 2, d // 4, d // 8, latent_dim * 2]
    params = {}
    keys = jax.random.split(key, 8)
    for i in range(4):
        fan_in, fan_out = dims[i], dims[i + 1]
        bound = 1.0 / jnp.sqrt(fan_in)
        params[f"w{i+1}"] = jax.random.uniform(
            keys[2 * i], (fan_in, fan_out), jnp.float32, -bound, bound)
        params[f"b{i+1}"] = jax.random.uniform(
            keys[2 * i + 1], (fan_out,), jnp.float32, -bound, bound)
    return params


def _reference(x, h, params, eps, latent_dim):
    xh = jnp.concatenate([h, x], axis=-1)
    a = jnp.maximum(xh @ params["w1"] + params["b1"], 0.0)
    a = jnp.maximum(a @ params["w2"] + params["b2"], 0.0)
    a = jnp.maximum(a @ params["w3"] + params["b3"], 0.0)
    lp = a @ params["w4"] + params["b4"]
    mean, log_var = lp[:, :latent_dim], lp[:, latent_dim:]
    std = jnp.exp(0.5 * jnp.clip(log_var, -10.0, 10.0))
    return mean + std * eps, mean, std


if __name__ == "__main__":
    # Config consistent with the module: input_dim=32, hidden_dim=32,
    # latent_dim=4  ->  MLP sizes 64 -> 32 -> 16 -> 8 -> 8 (= 2*latent_dim).
    INPUT_DIM, HIDDEN_DIM, LATENT_DIM = 32, 32, 4

    key = jax.random.PRNGKey(0)
    k_p, k_data = jax.random.split(key)
    params = init_params(k_p, INPUT_DIM, HIDDEN_DIM, LATENT_DIM)

    # Packed f32 params (default, v5e-friendly) -- built once, reused per call.
    wpack, bpack, meta = prepare_params(params, INPUT_DIM, HIDDEN_DIM, LATENT_DIM)

    for batch in (8, 300):   # single-tile grid, and padded multi-block grid
        kx, kh, ke, k_data = jax.random.split(k_data, 4)
        x = jax.random.normal(kx, (batch, INPUT_DIM), jnp.float32)
        h = jax.random.normal(kh, (batch, HIDDEN_DIM), jnp.float32)
        # eps for the reparameterization trick (rsample), drawn outside the kernel.
        eps = jax.random.normal(ke, (batch, LATENT_DIM), jnp.float32)

        sample, mean, std = encoder_forward(x, h, eps, wpack, bpack, meta=meta)
        jax.block_until_ready((sample, mean, std))

        sample_ref, mean_ref, std_ref = _reference(x, h, params, eps, LATENT_DIM)
        assert jnp.allclose(mean, mean_ref, atol=1e-4, rtol=1e-4)
        assert jnp.allclose(std, std_ref, atol=1e-4, rtol=1e-4)
        assert jnp.allclose(sample, sample_ref, atol=1e-4, rtol=1e-4)

    # Optional bf16 MXU-input path (v6e/v7x); f32 accumulation + f32 epilogue.
    wpack_bf, bpack_bf, meta_bf = prepare_params(
        params, INPUT_DIM, HIDDEN_DIM, LATENT_DIM, compute_dtype=jnp.bfloat16)
    sample_bf, mean_bf, std_bf = encoder_forward(
        x, h, eps, wpack_bf, bpack_bf, meta=meta_bf)
    jax.block_until_ready((sample_bf, mean_bf, std_bf))
    assert jnp.allclose(mean_bf, mean_ref, atol=1e-1, rtol=1e-1)
    assert jnp.allclose(std_bf, std_ref, atol=1e-1, rtol=1e-1)
    assert jnp.allclose(sample_bf, sample_ref, atol=1e-1, rtol=1e-1)

    print("KERNEL_OK")
</pallas_src>

<mosaic_0001>
module attributes {stable_mosaic.version = 11 : i64} {
  func.func @_encoder_kernel(%arg0: i32, %arg1: memref<32x128xf32, #tpu.memory_space<vmem>>, %arg2: memref<32x128xf32, #tpu.memory_space<vmem>>, %arg3: memref<4x128xf32, #tpu.memory_space<vmem>>, %arg4: memref<136x32xf32, #tpu.memory_space<vmem>>, %arg5: memref<104x1xf32, #tpu.memory_space<vmem>>, %arg6: memref<12x128xf32, #tpu.memory_space<vmem>>) attributes {dimension_semantics = [#tpu.dimension_semantics<parallel>], iteration_bounds = array<i64: 1>, scalar_prefetch = 0 : i64, scratch_operands = 0 : i64, tpu.core_type = #tpu.core_type<tc>, window_params = [{transform_indices = @transform_0, window_bounds = array<i64: 32, 128>}, {transform_indices = @transform_1, window_bounds = array<i64: 32, 128>}, {transform_indices = @transform_2, window_bounds = array<i64: 4, 128>}, {pipeline_mode = #tpu.pipeline_mode<synchronous>, transform_indices = @transform_3, window_bounds = array<i64: 136, 32>}, {pipeline_mode = #tpu.pipeline_mode<synchronous>, transform_indices = @transform_4, window_bounds = array<i64: 104, 1>}, {transform_indices = @transform_5, window_bounds = array<i64: 12, 128>}]} {
    %c0 = arith.constant 0 : index
    %c0_0 = arith.constant 0 : index
    %0 = vector.load %arg2[%c0, %c0_0] : memref<32x128xf32, #tpu.memory_space<vmem>>, vector<32x128xf32>
    %c0_1 = arith.constant 0 : index
    %c0_2 = arith.constant 0 : index
    %1 = vector.load %arg1[%c0_1, %c0_2] : memref<32x128xf32, #tpu.memory_space<vmem>>, vector<32x128xf32>
    %c0_3 = arith.constant 0 : index
    %c0_4 = arith.constant 0 : index
    %2 = vector.load %arg4[%c0_3, %c0_4] : memref<136x32xf32, #tpu.memory_space<vmem>>, vector<32x32xf32>
    %c32 = arith.constant 32 : index
    %c0_5 = arith.constant 0 : index
    %3 = vector.load %arg4[%c32, %c0_5] : memref<136x32xf32, #tpu.memory_space<vmem>>, vector<32x32xf32>
    %c64 = arith.constant 64 : index
    %c0_6 = arith.constant 0 : index
    %4 = vector.load %arg4[%c64, %c0_6] : memref<136x32xf32, #tpu.memory_space<vmem>>, vector<32x32xf32>
    %c96 = arith.constant 96 : index
    %c0_7 = arith.constant 0 : index
    %5 = vector.load %arg4[%c96, %c0_7] : memref<136x32xf32, #tpu.memory_space<vmem>>, vector<32x32xf32>
    %c128 = arith.constant 128 : index
    %c0_8 = arith.constant 0 : index
    %6 = vector.load %arg4[%c128, %c0_8] : memref<136x32xf32, #tpu.memory_space<vmem>>, vector<8x32xf32>
    %c0_9 = arith.constant 0 : index
    %c0_10 = arith.constant 0 : index
    %7 = vector.load %arg5[%c0_9, %c0_10] : memref<104x1xf32, #tpu.memory_space<vmem>>, vector<32x1xf32>
    %c32_11 = arith.constant 32 : index
    %c0_12 = arith.constant 0 : index
    %8 = vector.load %arg5[%c32_11, %c0_12] : memref<104x1xf32, #tpu.memory_space<vmem>>, vector<32x1xf32>
    %c64_13 = arith.constant 64 : index
    %c0_14 = arith.constant 0 : index
    %9 = vector.load %arg5[%c64_13, %c0_14] : memref<104x1xf32, #tpu.memory_space<vmem>>, vector<32x1xf32>
    %c96_15 = arith.constant 96 : index
    %c0_16 = arith.constant 0 : index
    %10 = vector.load %arg5[%c96_15, %c0_16] : memref<104x1xf32, #tpu.memory_space<vmem>>, vector<8x1xf32>
    %cst = arith.constant dense<0.000000e+00> : vector<32x128xf32>
    %11 = tpu.matmul %2, %0, %cst {dimension_numbers = #tpu.dot_dimension_numbers<[1], [0], [0], [1], [0, 0, 1, 1], [], []>} : vector<32x32xf32>, vector<32x128xf32>, vector<32x128xf32> -> vector<32x128xf32>
    %cst_17 = arith.constant dense<0.000000e+00> : vector<32x128xf32>
    %12 = tpu.matmul %3, %1, %cst_17 {dimension_numbers = #tpu.dot_dimension_numbers<[1], [0], [0], [1], [0, 0, 1, 1], [], []>} : vector<32x32xf32>, vector<32x128xf32>, vector<32x128xf32> -> vector<32x128xf32>
    %13 = arith.addf %11, %12 : vector<32x128xf32>
    %14 = vector.broadcast %7 : vector<32x1xf32> to vector<32x128xf32>
    %15 = arith.addf %13, %14 : vector<32x128xf32>
    %cst_18 = arith.constant 0.000000e+00 : f32
    %16 = vector.broadcast %cst_18 : f32 to vector<32x128xf32>
    %17 = arith.maximumf %15, %16 : vector<32x128xf32>
    %cst_19 = arith.constant dense<0.000000e+00> : vector<32x128xf32>
    %18 = tpu.matmul %4, %17, %cst_19 {dimension_numbers = #tpu.dot_dimension_numbers<[1], [0], [0], [1], [0, 0, 1, 1], [], []>} : vector<32x32xf32>, vector<32x128xf32>, vector<32x128xf32> -> vector<32x128xf32>
    %19 = vector.broadcast %8 : vector<32x1xf32> to vector<32x128xf32>
    %20 = arith.addf %18, %19 : vector<32x128xf32>
    %cst_20 = arith.constant 0.000000e+00 : f32
    %21 = vector.broadcast %cst_20 : f32 to vector<32x128xf32>
    %22 = arith.maximumf %20, %21 : vector<32x128xf32>
    %cst_21 = arith.constant dense<0.000000e+00> : vector<32x128xf32>
    %23 = tpu.matmul %5, %22, %cst_21 {dimension_numbers = #tpu.dot_dimension_numbers<[1], [0], [0], [1], [0, 0, 1, 1], [], []>} : vector<32x32xf32>, vector<32x128xf32>, vector<32x128xf32> -> vector<32x128xf32>
    %24 = vector.broadcast %9 : vector<32x1xf32> to vector<32x128xf32>
    %25 = arith.addf %23, %24 : vector<32x128xf32>
    %cst_22 = arith.constant 0.000000e+00 : f32
    %26 = vector.broadcast %cst_22 : f32 to vector<32x128xf32>
    %27 = arith.maximumf %25, %26 : vector<32x128xf32>
    %cst_23 = arith.constant dense<0.000000e+00> : vector<8x128xf32>
    %28 = tpu.matmul %6, %27, %cst_23 {dimension_numbers = #tpu.dot_dimension_numbers<[1], [0], [0], [1], [0, 0, 1, 1], [], []>} : vector<8x32xf32>, vector<32x128xf32>, vector<8x128xf32> -> vector<8x128xf32>
    %29 = vector.broadcast %10 : vector<8x1xf32> to vector<8x128xf32>
    %30 = arith.addf %28, %29 : vector<8x128xf32>
    %31 = vector.extract_strided_slice %30 {offsets = [0, 0], sizes = [4, 128], strides = [1, 1]} : vector<8x128xf32> to vector<4x128xf32>
    %32 = vector.extract_strided_slice %30 {offsets = [4, 0], sizes = [4, 128], strides = [1, 1]} : vector<8x128xf32> to vector<4x128xf32>
    %cst_24 = arith.constant -1.000000e+01 : f32
    %cst_25 = arith.constant 1.000000e+01 : f32
    %33 = vector.broadcast %cst_24 : f32 to vector<4x128xf32>
    %34 = arith.maximumf %33, %32 : vector<4x128xf32>
    %35 = vector.broadcast %cst_25 : f32 to vector<4x128xf32>
    %36 = arith.minimumf %35, %34 : vector<4x128xf32>
    %cst_26 = arith.constant 5.000000e-01 : f32
    %37 = vector.broadcast %cst_26 : f32 to vector<4x128xf32>
    %38 = arith.mulf %37, %36 : vector<4x128xf32>
    %39 = math.exp %38 : vector<4x128xf32>
    %c0_27 = arith.constant 0 : index
    %c0_28 = arith.constant 0 : index
    %40 = vector.load %arg3[%c0_27, %c0_28] : memref<4x128xf32, #tpu.memory_space<vmem>>, vector<4x128xf32>
    %41 = arith.mulf %39, %40 : vector<4x128xf32>
    %42 = arith.addf %31, %41 : vector<4x128xf32>
    %43 = tpu.concatenate %42, %31, %39 in 0 : vector<4x128xf32>, vector<4x128xf32>, vector<4x128xf32> -> vector<12x128xf32>
    %c0_29 = arith.constant 0 : index
    %c0_30 = arith.constant 0 : index
    %44 = vector.load %arg6[%c0_29, %c0_30] : memref<12x128xf32, #tpu.memory_space<vmem>>, vector<12x128xf32>
    tpu.vector_store %arg6[%c0_29, %c0_30], %43 {strides = array<i32>} : memref<12x128xf32, #tpu.memory_space<vmem>>, vector<12x128xf32>,
    return
  }
  func.func @transform_0(%arg0: i32) -> (i32, i32) {
    %c0_i32 = arith.constant 0 : i32
    %c0_i32_0 = arith.constant 0 : i32
    return %c0_i32, %arg0 : i32, i32
  }
  func.func @transform_1(%arg0: i32) -> (i32, i32) {
    %c0_i32 = arith.constant 0 : i32
    %c0_i32_0 = arith.constant 0 : i32
    return %c0_i32, %arg0 : i32, i32
  }
  func.func @transform_2(%arg0: i32) -> (i32, i32) {
    %c0_i32 = arith.constant 0 : i32
    %c0_i32_0 = arith.constant 0 : i32
    return %c0_i32, %arg0 : i32, i32
  }
  func.func @transform_3(%arg0: i32) -> (i32, i32) {
    %c0_i32 = arith.constant 0 : i32
    %c0_i32_0 = arith.constant 0 : i32
    %c0_i32_1 = arith.constant 0 : i32
    return %c0_i32, %c0_i32_0 : i32, i32
  }
  func.func @transform_4(%arg0: i32) -> (i32, i32) {
    %c0_i32 = arith.constant 0 : i32
    %c0_i32_0 = arith.constant 0 : i32
    %c0_i32_1 = arith.constant 0 : i32
    return %c0_i32, %c0_i32_0 : i32, i32
  }
  func.func @transform_5(%arg0: i32) -> (i32, i32) {
    %c0_i32 = arith.constant 0 : i32
    %c0_i32_0 = arith.constant 0 : i32
    return %c0_i32, %arg0 : i32, i32
  }
}

</mosaic_0001>

<bundles_post_ra>
// kernel: encoder_forward.1
= control target key start
LH: loop header
LB: loop body
LE: loop exit
PB: predicated region body
PF: predicated region fallthrough
CT: control target
= control target key end

     0   :  { %v758_v3 = vmov 0   ;;  %vm58_vm0 = vcmask 261120   ;;  %vm760_vm1 = vmmov 0   ;;  %vm621_vm2 = vcmask 1043456   ;;  %s931_s0 = inlined_call_operand.vmem [shape: f32[32,128], index: 0, kind: input, shape index: {}]   ;;  %s932_s1 = inlined_call_operand.vmem [shape: f32[32,128], index: 1, kind: input, shape index: {}]   ;;  %s933_s3 = inlined_call_operand.vmem [shape: f32[136,32], index: 3, kind: input, shape index: {}]   ;;  %s934_s4 = inlined_call_operand.vmem [shape: f32[104,1], index: 4, kind: input, shape index: {}]   ;;  %s935_s2 = inlined_call_operand.vmem [shape: f32[4,128], index: 2, kind: input, shape index: {}]   ;;  %s936_s5 = inlined_call_operand.vmem [shape: f32[12,128], index: 5, kind: output, shape index: {}]  }
   0x1   :  { %v27_v0 = vld [vmem:[%s931_s0 + $0x18] sm:$0xff]  ;;  %v26_v2 = vld [vmem:[%s931_s0 + $0x10] sm:$0xff]  ;;  %754 = vset.pattern.permute.xlu0 %v758_v3  ;;  %755 = vset.pattern.permute.xlu1 %v758_v3  ;;  %v25_v5 = vld [vmem:[%s931_s0 + $0x8] sm:$0xff] }
   0x2   :  { %v23_v1 = vld [vmem:[%s932_s1 + $0x18] sm:$0xff]  ;;  %684 = vmatprep.subr.mxu0 %v27_v0  ;;  %v22_v4 = vld [vmem:[%s932_s1 + $0x10] sm:$0xff]  ;;  %v21_v6 = vld [vmem:[%s932_s1 + $0x8] sm:$0xff] }
   0x3   :  { %698 = vmatprep.subr.mxu1 %v23_v1  ;;  %685 = vmatpush3.msra.mxu0 %v27_v0  ;;  %v24_v7 = vld [vmem:[%s931_s0] sm:$0xff]  ;;  %v33_v11 = vld [vmem:[%s933_s3 + $0x28] sm:$0xff]  ;;  %v34_v13 = vld [vmem:[%s933_s3 + $0x30] sm:$0xff] }
   0x4   :  { %699 = vmatpush3.msra.mxu1 %v23_v1  ;;  %686 = vmatprep.subr.mxu0 %v26_v2  ;;  %v20_v8 = vld [vmem:[%s932_s1] sm:$0xff]  ;;  %v29_v12 = vld [vmem:[%s933_s3 + $0x8] sm:$0xff]  ;;  %v30_v14 = vld [vmem:[%s933_s3 + $0x10] sm:$0xff] }
   0x5   :  { %700 = vmatprep.subr.mxu1 %v22_v4  ;;  %687 = vmatpush3.msra.mxu0 %v26_v2  ;;  %v32_v9 = vld [vmem:[%s933_s3 + $0x20] sm:$0xff]  ;;  %v48_v15 = vld [vmem:[%s934_s4 + $0x18] sm:$0xff]  ;;  %v46_v16 = vld [vmem:[%s934_s4 + $0x8] sm:$0xff] }
   0x6   :  { %701 = vmatpush3.msra.mxu1 %v22_v4  ;;  %688 = vmatprep.subr.mxu0 %v25_v5  ;;  %v28_v10 = vld [vmem:[%s933_s3] sm:$0xff]  ;;  %v35_v17 = vld [vmem:[%s933_s3 + $0x38] sm:$0xff]  ;;  %v47_v19 = vld [vmem:[%s934_s4 + $0x10] sm:$0xff] }
   0x7   :  { %702 = vmatprep.subr.mxu1 %v21_v6  ;;  %689 = vmatpush3.msra.mxu0 %v25_v5  ;;  %v31_v18 = vld [vmem:[%s933_s3 + $0x18] sm:$0xff]  ;;  %v45_v20 = vld [vmem:[%s934_s4] sm:$0xff]  ;;  %v51_v22 = vld [vmem:[%s934_s4 + $0x30] sm:$0xff] }
   0x8   :  { %703 = vmatpush3.msra.mxu1 %v21_v6  ;;  %690 = vmatprep.subr.mxu0 %v24_v7  ;;  %v52_v21 = vld [vmem:[%s934_s4 + $0x38] sm:$0xff]  ;;  %v50_v23 = vld [vmem:[%s934_s4 + $0x28] sm:$0xff]  ;;  %v49_v24 = vld [vmem:[%s934_s4 + $0x20] sm:$0xff] }
   0x9   :  { %704 = vmatprep.subr.mxu1 %v20_v8  ;;  %691 = vmatpush3.msra.mxu0 %v24_v7  ;;  %v56_v25 = vld [vmem:[%s934_s4 + $0x58] sm:$0xff]  ;;  %v55_v26 = vld [vmem:[%s934_s4 + $0x50] sm:$0xff]  ;;  %v54_v27 = vld [vmem:[%s934_s4 + $0x48] sm:$0xff] }
   0xa   :  { %692 = vmatprep.mubr.msk.f32.mxu0 %vm58_vm0, %v32_v9  ;;  %705 = vmatpush3.msra.mxu1 %v20_v8  ;;  %v53_v28 = vld [vmem:[%s934_s4 + $0x40] sm:$0xff]  ;;  %v37_v55 = vld [vmem:[%s933_s3 + $0x48] sm:$0xff]  ;;  %v38_v56 = vld [vmem:[%s933_s3 + $0x50] sm:$0xff] }
   0xb   :  { %706 = vmatprep.mubr.msk.f32.mxu1 %vm58_vm0, %v28_v10  ;;  %693 = vmatmul.mubr.msk.f32.vlgmr.msra.gmra.mxu0 %vm58_vm0, %v33_v11  ;;  %v57_v29 = vld [vmem:[%s934_s4 + $0x60] sm:$0xff]  ;;  %v39_v57 = vld [vmem:[%s933_s3 + $0x58] sm:$0xff]  ;;  %v41_v11 = vld [vmem:[%s933_s3 + $0x68] sm:$0xff] }
   0xc   :  { %707 = vmatmul.mubr.msk.f32.vlgmr.msra.gmra.mxu1 %vm58_vm0, %v29_v12  ;;  %695 = vmatprep.mubr.msk.f32.mxu0 %vm58_vm0, %v34_v13  ;;  %v36_v30 = vld [vmem:[%s933_s3 + $0x40] sm:$0xff]  ;;  %v42_v12 = vld [vmem:[%s933_s3 + $0x70] sm:$0xff]  ;;  %v43_v13 = vld [vmem:[%s933_s3 + $0x78] sm:$0xff] }
   0xd   :  { %709 = vmatprep.mubr.msk.f32.mxu1 %vm58_vm0, %v30_v14  ;;  %270 = vperm.xlu0 %754, %v48_v15   ;;  %v40_v58 = vld [vmem:[%s933_s3 + $0x60] sm:$0xff]  ;;  %v759_v14 = vmov 0.0  }
   0xe   :  { %260 = vperm.xlu1 %755, %v46_v16  }
   0xf   :  { %696 = vmatmul.mubr.msk.f32.gmra.mxu0 %vm58_vm0, %v35_v17 }
  0x10   :  { %710 = vmatmul.mubr.msk.f32.gmra.mxu1 %vm58_vm0, %v31_v18  ;;  %720 = vmatprep.mubr.msk.f32.mxu0 %vm58_vm0, %v36_v30 }
  0x11   :  { %265 = vperm.xlu0 %754, %v47_v19   ;;  %734 = vmatprep.mubr.msk.f32.mxu1 %vm58_vm0, %v40_v58 }
  0x12   :  { %255 = vperm.xlu1 %755, %v45_v20  }
  0x15   :  { %298 = vperm.xlu0 %754, %v52_v21  }
  0x16   :  { %293 = vperm.xlu1 %755, %v51_v22  }
  0x19   :  { %288 = vperm.xlu0 %754, %v50_v23  }
  0x1a   :  { %283 = vperm.xlu1 %755, %v49_v24  }
  0x1d   :  { %419 = vperm.xlu0 %754, %v56_v25  }
  0x1e   :  { %414 = vperm.xlu1 %755, %v55_v26  }
  0x21   :  { %409 = vperm.xlu0 %754, %v54_v27  }
  0x22   :  { %404 = vperm.xlu1 %755, %v53_v28  }
  0x25   :  { %525 = vperm.xlu0 %754, %v57_v29  }
  0x88   :  { %v271_v33 = vpop.permute.xlu0 %270 }
  0x89   :  { %v261_v36 = vpop.permute.xlu1 %260 }
  0x8c   :  { %v266_v46 = vpop.permute.xlu0 %265 }
  0x8d   :  { %v256_v50 = vpop.permute.xlu1 %255 }
  0x90   :  { %v299_v59 = vpop.permute.xlu0 %298 }
  0x91   :  { %v294_v61 = vpop.permute.xlu1 %293 }
  0x94   :  { %v289_v1 = vpop.permute.xlu0 %288 }
  0x95   :  { %v284_v6 = vpop.permute.xlu1 %283 }
  0x98   :  { %v420_v15 = vpop.permute.xlu0 %419 }
  0x99   :  { %v415_v17 = vpop.permute.xlu1 %414 }
  0x9c   :  { %v410_v21 = vpop.permute.xlu0 %409 }
  0x9d   :  { %v405_v26 = vpop.permute.xlu1 %404 }
  0xcb   :  { %v694_v31 = vpop.f32.mrf.mxu0 }
  0xcc   :  { %v708_v32 = vpop.f32.mrf.mxu1 }
  0xcd   :  { %v137_v34 = vpop.f32.mrf.mxu0  ;;  %v240_v39 = vadd.f32 %v708_v32, %v694_v31  ;;  %v44_v31 = vld [vmem:[%s933_s3 + $0x80] sm:$0xff]  ;;  %v526_v32 = vpop.permute.xlu0 %525 }
  0xce   :  { %v234_v35 = vpop.f32.mrf.mxu1 }
  0xcf   :  { %v697_v37 = vpop.f32.mrf.mxu0  ;;  %v235_v43 = vadd.f32 %v234_v35, %v137_v34  ;;  %v274_v47 = vadd.f32 %v261_v36, %v240_v39  ;;  %v606_v39 = vld [vmem:[%s935_s2] sm:$0xf] }
  0xd0   :  { %v711_v38 = vpop.f32.mrf.mxu1 }
  0xd1   :  { %v250_v40 = vadd.f32 %v711_v38, %v697_v37  ;;  %v147_v41 = vpop.f32.mrf.mxu0  ;;  %v273_v51 = vadd.f32 %v256_v50, %v235_v43  ;;  %v278_v53 = vmax.f32 %v274_v47, 0.0 }
  0xd2   :  { %v244_v42 = vpop.f32.mrf.mxu1 }
  0xd3   :  { %v276_v44 = vadd.f32 %v271_v33, %v250_v40  ;;  %v245_v45 = vadd.f32 %v244_v42, %v147_v41  ;;  %v277_v54 = vmax.f32 %v273_v51, 0.0  ;;  %v608_v40 = vrot.slane %v606_v39, 4 }
  0xd5   :  { %v280_v48 = vmax.f32 %v276_v44, 0.0  ;;  %v275_v49 = vadd.f32 %v266_v46, %v245_v45 }
  0xd7   :  { %v279_v52 = vmax.f32 %v275_v49, 0.0  ;;  %712 = vmatprep.subr.mxu0 %v280_v48 }
  0xd8   :  { %713 = vmatpush3.msra.mxu0 %v280_v48 }
  0xd9   :  { %714 = vmatprep.subr.mxu0 %v279_v52 }
  0xda   :  { %715 = vmatpush3.msra.mxu0 %v279_v52 }
  0xdb   :  { %716 = vmatprep.subr.mxu0 %v278_v53 }
  0xdc   :  { %717 = vmatpush3.msra.mxu0 %v278_v53 }
  0xdd   :  { %718 = vmatprep.subr.mxu0 %v277_v54 }
  0xde   :  { %719 = vmatpush3.msra.mxu0 %v277_v54 }
  0xdf   :  { %721 = vmatmul.mubr.msk.f32.vlgmr.msra.gmra.mxu0 %vm58_vm0, %v37_v55  ;;  %740 = vmatprep.subr.mxu0 %v759_v14 }
  0xe0   :  { %723 = vmatprep.mubr.msk.f32.mxu0 %vm58_vm0, %v38_v56 }
  0xe3   :  { %724 = vmatmul.mubr.msk.f32.gmra.mxu0 %vm58_vm0, %v39_v57 }
  0xe4   :  { %748 = vmatprep.mubr.msk.f32.mxu0 %vm760_vm1, %v759_v14 }
 0x19f   :  { %v722_v60 = vpop.f32.mrf.mxu0 }
 0x1a0   :  { %v385_v3 = vadd.f32 %v722_v60, %v289_v1 }
 0x1a1   :  { %v379_v62 = vpop.f32.mrf.mxu0 }
 0x1a2   :  { %v380_v7 = vadd.f32 %v379_v62, %v284_v6  ;;  %v399_v9 = vmax.f32 %v385_v3, 0.0 }
 0x1a3   :  { %v725_v63 = vpop.f32.mrf.mxu0 }
 0x1a4   :  { %v395_v0 = vadd.f32 %v725_v63, %v299_v59  ;;  %v398_v10 = vmax.f32 %v380_v7, 0.0 }
 0x1a5   :  { %v389_v2 = vpop.f32.mrf.mxu0 }
 0x1a6   :  { %v401_v4 = vmax.f32 %v395_v0, 0.0  ;;  %v390_v5 = vadd.f32 %v389_v2, %v294_v61 }
 0x1a8   :  { %v400_v8 = vmax.f32 %v390_v5, 0.0  ;;  %726 = vmatprep.subr.mxu1 %v401_v4 }
 0x1a9   :  { %727 = vmatpush3.msra.mxu1 %v401_v4 }
 0x1aa   :  { %728 = vmatprep.subr.mxu1 %v400_v8 }
 0x1ab   :  { %729 = vmatpush3.msra.mxu1 %v400_v8 }
 0x1ac   :  { %730 = vmatprep.subr.mxu1 %v399_v9 }
 0x1ad   :  { %731 = vmatpush3.msra.mxu1 %v399_v9 }
 0x1ae   :  { %732 = vmatprep.subr.mxu1 %v398_v10 }
 0x1af   :  { %733 = vmatpush3.msra.mxu1 %v398_v10 }
 0x1b0   :  { %735 = vmatmul.mubr.msk.f32.vlgmr.msra.gmra.mxu1 %vm58_vm0, %v41_v11 }
 0x1b1   :  { %737 = vmatprep.mubr.msk.f32.mxu1 %vm58_vm0, %v42_v12 }
 0x1b4   :  { %738 = vmatmul.mubr.msk.f32.gmra.mxu1 %vm58_vm0, %v43_v13 }
 0x270   :  { %v736_v16 = vpop.f32.mrf.mxu1 }
 0x271   :  { %v506_v23 = vadd.f32 %v736_v16, %v410_v21 }
 0x272   :  { %v500_v18 = vpop.f32.mrf.mxu1 }
 0x273   :  { %v501_v27 = vadd.f32 %v500_v18, %v405_v26  ;;  %v520_v29 = vmax.f32 %v506_v23, 0.0 }
 0x274   :  { %v739_v19 = vpop.f32.mrf.mxu1 }
 0x275   :  { %v516_v20 = vadd.f32 %v739_v19, %v420_v15  ;;  %v519_v30 = vmax.f32 %v501_v27, 0.0 }
 0x276   :  { %v510_v22 = vpop.f32.mrf.mxu1 }
 0x277   :  { %v522_v24 = vmax.f32 %v516_v20, 0.0  ;;  %v511_v25 = vadd.f32 %v510_v22, %v415_v17 }
 0x279   :  { %v521_v28 = vmax.f32 %v511_v25, 0.0  ;;  %741 = vmatpush3.msra.mxu0 %v522_v24 }
 0x27a   :  { %742 = vmatprep.subr.mxu0 %v759_v14 }
 0x27b   :  { %743 = vmatpush3.msra.mxu0 %v521_v28 }
 0x27c   :  { %744 = vmatprep.subr.mxu0 %v759_v14 }
 0x27d   :  { %745 = vmatpush3.msra.mxu0 %v520_v29 }
 0x27e   :  { %746 = vmatprep.subr.mxu0 %v759_v14 }
 0x27f   :  { %747 = vmatpush3.msra.mxu0 %v519_v30 }
 0x280   :  { %749 = vmatmul.mubr.msk.f32.vlgmr.msra.gmra.mxu0 %vm58_vm0, %v44_v31 }
 0x340   :  { %v597_v33 = vpop.f32.mrf.mxu0 }
 0x341   :  { %v598_v34 = vadd.f32 %v597_v33, %v526_v32 }
 0x342   :  { %v750_v35 = vpop.f32.mrf.mxu0 }
 0x343   :  { %v646_v36 = vclamps-f32 %v598_v34, 10.0  ;;  %v616_v46 = vrot.slane %v598_v34, 4 }
 0x345   :  { %v603_v37 = vmul.f32 0.5, %v646_v36 }
 0x347   :  { %v604_v38 = vmul.f32 1.442695, %v603_v37 }
 0x349   :  { %756 = vpow2.f32 %v604_v38 }
 0x356   :  { %v757_v41 = vpop.eup %756 }
 0x357   :  { %v610_v42 = vmul.f32 %v757_v41, %v608_v40  ;;  %v619_v43 = vrot.slane %v757_v41, 4 }
 0x359   :  { %v612_v44 = vrot.slane %v610_v42, 4  ;;  %624 = vst [vmem:[%s936_s5 + $0x8] sm:$0xf] %v619_v43 }
 0x35b   :  { %v614_v45 = vadd.f32 %v612_v44, %v598_v34 }
 0x35d   :  { %v622_v47 = vsel %vm621_vm2, %v614_v45, %v616_v46 }
 0x35e   :  { %623 = vst [vmem:[%s936_s5] sm:$0xff] %v622_v47 }

</bundles_post_ra>
